<compile_context>
chip_gen: v6e
topology: v6e:2x2x1
jax: 0.10.0
libtpu: 0.0.40
codegen_flags: <defaults>
</compile_context>

<pallas_src>
import math

import jax
import jax.numpy as jnp
from jax.experimental import pallas as pl
from jax.experimental.pallas import tpu as pltpu

B, N, F = 4, 16, 32          # batch, node_n, in_features  (B*F = 128 lanes exactly)
EPS = 1e-5                   # nn.BatchNorm1d default eps


def gc_block_kernel(x_ref,
                    att1_ref, w1bd_ref, b1_ref, g1_ref, be1_ref,
                    att2_ref, w2bd_ref, b2_ref, g2_ref, be2_ref,
                    mavg_ref,
                    o_ref):
    # Everything lives in the lane-folded layout (N, B*F); zero relayouts below.
    x = x_ref[...]                                   # (N, B*F)
    m_avg = mavg_ref[...]                            # (B*F, B*F)

    def graph_conv(inp, att, w_bd, bias):
        # att @ (inp @ W) == (att @ inp) @ kron(I_B, W): batch stays folded in lanes.
        z = jnp.dot(att, inp, preferred_element_type=jnp.float32)      # (N, B*F)
        z = jnp.dot(z, w_bd, preferred_element_type=jnp.float32)       # (N, B*F)
        return z + bias                                                # bias: (1, B*F)

    def batch_norm(y, gamma, beta):
        # Training-mode BN over the batch (biased variance, PyTorch semantics).
        # y @ M_avg with M_avg = kron(ones(B,B)/B, I_F) = per-(n,f) batch mean,
        # already broadcast back over the batch — done on the MXU, no transposes.
        mean = jnp.dot(y, m_avg, preferred_element_type=jnp.float32)
        diff = y - mean
        var = jnp.dot(diff * diff, m_avg, preferred_element_type=jnp.float32)
        return diff * jax.lax.rsqrt(var + EPS) * gamma + beta

    # gc1 -> bn1 -> tanh -> dropout(identity) -> gc2 -> bn2 -> tanh -> dropout -> +x
    y = graph_conv(x, att1_ref[...], w1bd_ref[...], b1_ref[...])
    y = jnp.tanh(batch_norm(y, g1_ref[...], be1_ref[...]))
    # dropout with p_dropout=0.0 (or eval mode) is the identity
    y = graph_conv(y, att2_ref[...], w2bd_ref[...], b2_ref[...])
    y = jnp.tanh(batch_norm(y, g2_ref[...], be2_ref[...]))

    o_ref[...] = y + x


@jax.jit
def gc_block_forward(x, params):
    """x: (B, N, F) float32; params are the native PyTorch-layout parameters."""
    (w1, att1, b1, g1, be1, w2, att2, b2, g2, be2) = params
    b_, n_, f_ = x.shape

    # ---- wrapper-side layout plumbing (done once, outside the kernel) ----
    x_nbf = jnp.transpose(x, (1, 0, 2)).reshape(n_, b_ * f_)            # (N, B*F)
    eye_b = jnp.eye(b_, dtype=x.dtype)
    eye_f = jnp.eye(f_, dtype=x.dtype)
    w1_bd = jnp.kron(eye_b, w1)                                         # (B*F, B*F)
    w2_bd = jnp.kron(eye_b, w2)                                         # (B*F, B*F)
    m_avg = jnp.kron(jnp.full((b_, b_), 1.0 / b_, x.dtype), eye_f)      # (B*F, B*F)
    b1_t = jnp.tile(b1.reshape(1, f_), (1, b_))                         # (1, B*F)
    b2_t = jnp.tile(b2.reshape(1, f_), (1, b_))
    g1_t = jnp.tile(g1.reshape(n_, f_), (1, b_))                        # (N, B*F)
    be1_t = jnp.tile(be1.reshape(n_, f_), (1, b_))
    g2_t = jnp.tile(g2.reshape(n_, f_), (1, b_))
    be2_t = jnp.tile(be2.reshape(n_, f_), (1, b_))

    kernel_args = (x_nbf,
                   att1, w1_bd, b1_t, g1_t, be1_t,
                   att2, w2_bd, b2_t, g2_t, be2_t,
                   m_avg)
    vmem_spec = pl.BlockSpec(memory_space=pltpu.MemorySpace.VMEM)

    out_nbf = pl.pallas_call(
        gc_block_kernel,
        out_shape=jax.ShapeDtypeStruct((n_, b_ * f_), x.dtype),
        in_specs=[vmem_spec] * len(kernel_args),
        out_specs=vmem_spec,
    )(*kernel_args)

    # back to the module's native (B, N, F) layout
    return jnp.transpose(out_nbf.reshape(n_, b_, f_), (1, 0, 2))


def gc_block_reference(x, params):
    """Pure-JAX reference with the original module's semantics."""
    (w1, att1, b1, g1, be1, w2, att2, b2, g2, be2) = params
    bb, nn_, ff = x.shape

    def gc(inp, w, att, bias):
        s = jnp.einsum('bnf,fg->bng', inp, w)
        return jnp.einsum('nm,bmf->bnf', att, s) + bias[None, None, :]

    def bn(y, gamma, beta):
        yf = y.reshape(bb, nn_ * ff)
        mean = jnp.mean(yf, axis=0, keepdims=True)
        var = jnp.mean((yf - mean) ** 2, axis=0, keepdims=True)   # biased (training mode)
        out = (yf - mean) / jnp.sqrt(var + EPS) * gamma[None, :] + beta[None, :]
        return out.reshape(bb, nn_, ff)

    y = jnp.tanh(bn(gc(x, w1, att1, b1), g1, be1))
    y = jnp.tanh(bn(gc(y, w2, att2, b2), g2, be2))
    return y + x


def init_params(key):
    # Mirrors GraphConvolution.reset_parameters: U(-stdv, stdv), stdv = 1/sqrt(out_features)
    stdv = 1.0 / math.sqrt(F)
    ks = jax.random.split(key, 6)
    w1 = jax.random.uniform(ks[0], (F, F), jnp.float32, -stdv, stdv)
    att1 = jax.random.uniform(ks[1], (N, N), jnp.float32, -stdv, stdv)
    b1 = jax.random.uniform(ks[2], (F,), jnp.float32, -stdv, stdv)
    w2 = jax.random.uniform(ks[3], (F, F), jnp.float32, -stdv, stdv)
    att2 = jax.random.uniform(ks[4], (N, N), jnp.float32, -stdv, stdv)
    b2 = jax.random.uniform(ks[5], (F,), jnp.float32, -stdv, stdv)
    # BatchNorm affine params (PyTorch init: weight=1, bias=0).
    # TODO(synk): the module text declares BatchNorm1d(in_features) but applies it to the
    # flattened (N*F) view (original repo uses BatchNorm1d(node_n*in_features)); we follow
    # the runnable/original semantics with (N*F,)-sized affine params.
    g1 = jnp.ones((N * F,), jnp.float32)
    be1 = jnp.zeros((N * F,), jnp.float32)
    g2 = jnp.ones((N * F,), jnp.float32)
    be2 = jnp.zeros((N * F,), jnp.float32)
    return (w1, att1, b1, g1, be1, w2, att2, b2, g2, be2)


if __name__ == "__main__":
    key = jax.random.PRNGKey(0)
    k_x, k_p = jax.random.split(key)
    x = jax.random.normal(k_x, (B, N, F), jnp.float32)
    params = init_params(k_p)

    out = gc_block_forward(x, params)
    out = jax.block_until_ready(out)

    ref = gc_block_reference(x, params)
    assert out.shape == (B, N, F) and out.dtype == jnp.float32
    assert jnp.allclose(out, ref, atol=1e-4, rtol=1e-4), "mismatch vs JAX reference"
    print("KERNEL_OK")
</pallas_src>

<mosaic_0001>
module attributes {stable_mosaic.version = 11 : i64} {
  func.func @gc_block_kernel(%arg0: memref<16x128xf32, #tpu.memory_space<vmem>>, %arg1: memref<16x16xf32, #tpu.memory_space<vmem>>, %arg2: memref<128x128xf32, #tpu.memory_space<vmem>>, %arg3: memref<1x128xf32, #tpu.memory_space<vmem>>, %arg4: memref<16x128xf32, #tpu.memory_space<vmem>>, %arg5: memref<16x128xf32, #tpu.memory_space<vmem>>, %arg6: memref<16x16xf32, #tpu.memory_space<vmem>>, %arg7: memref<128x128xf32, #tpu.memory_space<vmem>>, %arg8: memref<1x128xf32, #tpu.memory_space<vmem>>, %arg9: memref<16x128xf32, #tpu.memory_space<vmem>>, %arg10: memref<16x128xf32, #tpu.memory_space<vmem>>, %arg11: memref<128x128xf32, #tpu.memory_space<vmem>>, %arg12: memref<16x128xf32, #tpu.memory_space<vmem>>) attributes {dimension_semantics = [], scalar_prefetch = 0 : i64, scratch_operands = 0 : i64, tpu.core_type = #tpu.core_type<tc>} {
    %c0 = arith.constant 0 : index
    %c0_0 = arith.constant 0 : index
    %0 = vector.load %arg0[%c0, %c0_0] : memref<16x128xf32, #tpu.memory_space<vmem>>, vector<16x128xf32>
    %c0_1 = arith.constant 0 : index
    %c0_2 = arith.constant 0 : index
    %1 = vector.load %arg11[%c0_1, %c0_2] : memref<128x128xf32, #tpu.memory_space<vmem>>, vector<128x128xf32>
    %c0_3 = arith.constant 0 : index
    %c0_4 = arith.constant 0 : index
    %2 = vector.load %arg1[%c0_3, %c0_4] : memref<16x16xf32, #tpu.memory_space<vmem>>, vector<16x16xf32>
    %c0_5 = arith.constant 0 : index
    %c0_6 = arith.constant 0 : index
    %3 = vector.load %arg2[%c0_5, %c0_6] : memref<128x128xf32, #tpu.memory_space<vmem>>, vector<128x128xf32>
    %c0_7 = arith.constant 0 : index
    %c0_8 = arith.constant 0 : index
    %4 = vector.load %arg3[%c0_7, %c0_8] : memref<1x128xf32, #tpu.memory_space<vmem>>, vector<1x128xf32>
    %cst = arith.constant dense<0.000000e+00> : vector<16x128xf32>
    %5 = tpu.matmul %2, %0, %cst {dimension_numbers = #tpu.dot_dimension_numbers<[1], [0], [0], [1], [0, 0, 1, 1], [], []>} : vector<16x16xf32>, vector<16x128xf32>, vector<16x128xf32> -> vector<16x128xf32>
    %cst_9 = arith.constant dense<0.000000e+00> : vector<16x128xf32>
    %6 = tpu.matmul %5, %3, %cst_9 {dimension_numbers = #tpu.dot_dimension_numbers<[1], [0], [0], [1], [0, 0, 1, 1], [], []>} : vector<16x128xf32>, vector<128x128xf32>, vector<16x128xf32> -> vector<16x128xf32>
    %7 = vector.broadcast %4 : vector<1x128xf32> to vector<16x128xf32>
    %8 = arith.addf %6, %7 : vector<16x128xf32>
    %c0_10 = arith.constant 0 : index
    %c0_11 = arith.constant 0 : index
    %9 = vector.load %arg4[%c0_10, %c0_11] : memref<16x128xf32, #tpu.memory_space<vmem>>, vector<16x128xf32>
    %c0_12 = arith.constant 0 : index
    %c0_13 = arith.constant 0 : index
    %10 = vector.load %arg5[%c0_12, %c0_13] : memref<16x128xf32, #tpu.memory_space<vmem>>, vector<16x128xf32>
    %cst_14 = arith.constant dense<0.000000e+00> : vector<16x128xf32>
    %11 = tpu.matmul %8, %1, %cst_14 {dimension_numbers = #tpu.dot_dimension_numbers<[1], [0], [0], [1], [0, 0, 1, 1], [], []>} : vector<16x128xf32>, vector<128x128xf32>, vector<16x128xf32> -> vector<16x128xf32>
    %12 = arith.subf %8, %11 : vector<16x128xf32>
    %13 = arith.mulf %12, %12 : vector<16x128xf32>
    %cst_15 = arith.constant dense<0.000000e+00> : vector<16x128xf32>
    %14 = tpu.matmul %13, %1, %cst_15 {dimension_numbers = #tpu.dot_dimension_numbers<[1], [0], [0], [1], [0, 0, 1, 1], [], []>} : vector<16x128xf32>, vector<128x128xf32>, vector<16x128xf32> -> vector<16x128xf32>
    %cst_16 = arith.constant 9.99999974E-6 : f32
    %15 = vector.broadcast %cst_16 : f32 to vector<16x128xf32>
    %16 = arith.addf %14, %15 : vector<16x128xf32>
    %17 = math.rsqrt %16 : vector<16x128xf32>
    %18 = arith.mulf %12, %17 : vector<16x128xf32>
    %19 = arith.mulf %18, %9 : vector<16x128xf32>
    %20 = arith.addf %19, %10 : vector<16x128xf32>
    %21 = math.tanh %20 : vector<16x128xf32>
    %c0_17 = arith.constant 0 : index
    %c0_18 = arith.constant 0 : index
    %22 = vector.load %arg6[%c0_17, %c0_18] : memref<16x16xf32, #tpu.memory_space<vmem>>, vector<16x16xf32>
    %c0_19 = arith.constant 0 : index
    %c0_20 = arith.constant 0 : index
    %23 = vector.load %arg7[%c0_19, %c0_20] : memref<128x128xf32, #tpu.memory_space<vmem>>, vector<128x128xf32>
    %c0_21 = arith.constant 0 : index
    %c0_22 = arith.constant 0 : index
    %24 = vector.load %arg8[%c0_21, %c0_22] : memref<1x128xf32, #tpu.memory_space<vmem>>, vector<1x128xf32>
    %cst_23 = arith.constant dense<0.000000e+00> : vector<16x128xf32>
    %25 = tpu.matmul %22, %21, %cst_23 {dimension_numbers = #tpu.dot_dimension_numbers<[1], [0], [0], [1], [0, 0, 1, 1], [], []>} : vector<16x16xf32>, vector<16x128xf32>, vector<16x128xf32> -> vector<16x128xf32>
    %cst_24 = arith.constant dense<0.000000e+00> : vector<16x128xf32>
    %26 = tpu.matmul %25, %23, %cst_24 {dimension_numbers = #tpu.dot_dimension_numbers<[1], [0], [0], [1], [0, 0, 1, 1], [], []>} : vector<16x128xf32>, vector<128x128xf32>, vector<16x128xf32> -> vector<16x128xf32>
    %27 = vector.broadcast %24 : vector<1x128xf32> to vector<16x128xf32>
    %28 = arith.addf %26, %27 : vector<16x128xf32>
    %c0_25 = arith.constant 0 : index
    %c0_26 = arith.constant 0 : index
    %29 = vector.load %arg9[%c0_25, %c0_26] : memref<16x128xf32, #tpu.memory_space<vmem>>, vector<16x128xf32>
    %c0_27 = arith.constant 0 : index
    %c0_28 = arith.constant 0 : index
    %30 = vector.load %arg10[%c0_27, %c0_28] : memref<16x128xf32, #tpu.memory_space<vmem>>, vector<16x128xf32>
    %cst_29 = arith.constant dense<0.000000e+00> : vector<16x128xf32>
    %31 = tpu.matmul %28, %1, %cst_29 {dimension_numbers = #tpu.dot_dimension_numbers<[1], [0], [0], [1], [0, 0, 1, 1], [], []>} : vector<16x128xf32>, vector<128x128xf32>, vector<16x128xf32> -> vector<16x128xf32>
    %32 = arith.subf %28, %31 : vector<16x128xf32>
    %33 = arith.mulf %32, %32 : vector<16x128xf32>
    %cst_30 = arith.constant dense<0.000000e+00> : vector<16x128xf32>
    %34 = tpu.matmul %33, %1, %cst_30 {dimension_numbers = #tpu.dot_dimension_numbers<[1], [0], [0], [1], [0, 0, 1, 1], [], []>} : vector<16x128xf32>, vector<128x128xf32>, vector<16x128xf32> -> vector<16x128xf32>
    %cst_31 = arith.constant 9.99999974E-6 : f32
    %35 = vector.broadcast %cst_31 : f32 to vector<16x128xf32>
    %36 = arith.addf %34, %35 : vector<16x128xf32>
    %37 = math.rsqrt %36 : vector<16x128xf32>
    %38 = arith.mulf %32, %37 : vector<16x128xf32>
    %39 = arith.mulf %38, %29 : vector<16x128xf32>
    %40 = arith.addf %39, %30 : vector<16x128xf32>
    %41 = math.tanh %40 : vector<16x128xf32>
    %42 = arith.addf %41, %0 : vector<16x128xf32>
    %c0_32 = arith.constant 0 : index
    %c0_33 = arith.constant 0 : index
    %43 = vector.load %arg12[%c0_32, %c0_33] : memref<16x128xf32, #tpu.memory_space<vmem>>, vector<16x128xf32>
    tpu.vector_store %arg12[%c0_32, %c0_33], %42 {strides = array<i32>} : memref<16x128xf32, #tpu.memory_space<vmem>>, vector<16x128xf32>,
    return
  }
}

</mosaic_0001>

<bundles_post_ra>
// kernel: tile.35
= control target key start
LH: loop header
LB: loop body
LE: loop exit
PB: predicated region body
PF: predicated region fallthrough
CT: control target
= control target key end

     0   :  { %vm83_vm0 = vcmask 1047556   ;;  %vm85_vm1 = vcmask 261120   ;;  %s196_s9 = smov 96   ;;  %s197_s14 = smov 32   ;;  %vm104_vm2 = vcmask 1048320   ;;  %vm125_vm3 = vcmask 785920   ;;  %s290_s0 = inlined_call_operand.vmem [shape: f32[16,4,32], index: 0, kind: input, shape index: {}]   ;;  %s291_s1 = inlined_call_operand.vmem [shape: f32[16,128], index: 1, kind: output, shape index: {}]  }
   0x1   :  { %v181_v0 = vld [vmem:[%s290_s0 + $0x1c] sm:$0xf]  ;;  %v182_v1 = vld [vmem:[%s290_s0 + $0x18] sm:$0xf]  ;;  %v183_v2 = vld [vmem:[%s290_s0 + $0x14] sm:$0xf] }
   0x2   :  { %49 = vst [vmem:[#allocation0 + $0x38] sm:$0xf] %v181_v0  ;;  %54 = vst [vmem:[#allocation0 + $0x30] sm:$0xf] %v182_v1  ;;  %v184_v3 = vld [vmem:[%s290_s0 + $0x10] sm:$0xf] }
   0x3   :  { %59 = vst [vmem:[#allocation0 + $0x28] sm:$0xf] %v183_v2  ;;  %v185_v4 = vld [vmem:[%s290_s0 + $0xc] sm:$0xf]  ;;  %v186_v5 = vld [vmem:[%s290_s0 + $0x8] sm:$0xf] }
   0x4   :  { %64 = vst [vmem:[#allocation0 + $0x20] sm:$0xf] %v184_v3  ;;  %69 = vst [vmem:[#allocation0 + $0x18] sm:$0xf] %v185_v4  ;;  %v187_v6 = vld [vmem:[%s290_s0 + $0x4] sm:$0xf] }
   0x5   :  { %74 = vst [vmem:[#allocation0 + $0x10] sm:$0xf] %v186_v5  ;;  %v79_v7 = vld [vmem:[%s290_s0] sm:$0xf]  ;;  %78 = vst [vmem:[#allocation0 + $0x8] sm:$0xf] %v187_v6 }
   0x6   :  { %80 = vst [vmem:[#allocation0] sm:$0xf] %v79_v7  ;;  %v173_v8 = vld [vmem:[%s290_s0 + $0x3c] sm:$0xf]  ;;  %v174_v9 = vld [vmem:[%s290_s0 + $0x38] sm:$0xf] }
   0x7   :  { %9 = vst [vmem:[#allocation0 + $0x78] sm:$0xf] %v173_v8  ;;  %14 = vst [vmem:[#allocation0 + $0x70] sm:$0xf] %v174_v9  ;;  %v175_v10 = vld [vmem:[%s290_s0 + $0x34] sm:$0xf] }
   0x8   :  { %v176_v11 = vld [vmem:[%s290_s0 + $0x30] sm:$0xf]  ;;  %v177_v12 = vld [vmem:[%s290_s0 + $0x2c] sm:$0xf]  ;;  %19 = vst [vmem:[#allocation0 + $0x68] sm:$0xf] %v175_v10 }
   0x9   :  { %24 = vst [vmem:[#allocation0 + $0x60] sm:$0xf] %v176_v11  ;;  %29 = vst [vmem:[#allocation0 + $0x58] sm:$0xf] %v177_v12  ;;  %v178_v13 = vld [vmem:[%s290_s0 + $0x28] sm:$0xf] }
   0xa   :  { %v179_v14 = vld [vmem:[%s290_s0 + $0x24] sm:$0xf]  ;;  %v180_v15 = vld [vmem:[%s290_s0 + $0x20] sm:$0xf]  ;;  %34 = vst [vmem:[#allocation0 + $0x50] sm:$0xf] %v178_v13 }
   0xb   :  { %39 = vst [vmem:[#allocation0 + $0x48] sm:$0xf] %v179_v14  ;;  %44 = vst [vmem:[#allocation0 + $0x40] sm:$0xf] %v180_v15  ;;  %s195_s0 = smov 64   ;;  %vm146_vm4 = vcmask 523520  }
   0xc   :  { %v120_v16 = vld [vmem:[#allocation0 + $0x2] ss:$8 sm:$0xf0]   ;;  %v99_v17 = vld [vmem:[#allocation0 + $0x3] ss:$8 sm:$0xf0]  }
   0xd   :  { %v118_v18 = vld [vmem:[#allocation0 + $0x2] ss:$8 sm:$0xf]   ;;  %v97_v19 = vld [vmem:[#allocation0 + $0x3] ss:$8 sm:$0xf]  }
   0xe   :  { %v122_v20 = vsel %vm83_vm0, %v120_v16, %v118_v18  ;;  %v101_v21 = vsel %vm83_vm0, %v99_v17, %v97_v19  ;;  %v139_v24 = vld [vmem:[#allocation0 + $0x1] ss:$8 sm:$0xf]   ;;  %v81_v32 = vld [vmem:[#allocation0] ss:$8 sm:$0xf]  }
   0xf   :  { %123 = vrot.lane.b32.xlu1 %v122_v20, %s195_s0  ;;  %102 = vrot.lane.b32.xlu0 %v101_v21, %s196_s9  ;;  %v141_v25 = vld [vmem:[#allocation0 + $0x1] ss:$8 sm:$0xf0]   ;;  %v82_v33 = vld [vmem:[#allocation0] ss:$8 sm:$0xf0]  }
  0x10   :  { %v130_v22 = vld [vmem:[#allocation0 + $0x42] ss:$8 sm:$0xf0]   ;;  %v109_v23 = vld [vmem:[#allocation0 + $0x43] ss:$8 sm:$0xf0]   ;;  %v84_v34 = vsel %vm83_vm0, %v82_v33, %v81_v32  ;;  %v143_v38 = vsel %vm83_vm0, %v141_v25, %v139_v24 }
  0x11   :  { %v151_v31 = vld [vmem:[#allocation0 + $0x41] ss:$8 sm:$0xf0]   ;;  %v90_v36 = vld [vmem:[#allocation0 + $0x40] ss:$8 sm:$0xf0]  }
  0x12   :  { %v128_v26 = vld [vmem:[#allocation0 + $0x42] ss:$8 sm:$0xf]   ;;  %v107_v27 = vld [vmem:[#allocation0 + $0x43] ss:$8 sm:$0xf]  }
  0x13   :  { %v132_v28 = vsel %vm83_vm0, %v130_v22, %v128_v26  ;;  %v111_v29 = vsel %vm83_vm0, %v109_v23, %v107_v27  ;;  %v149_v30 = vld [vmem:[#allocation0 + $0x41] ss:$8 sm:$0xf]   ;;  %v88_v35 = vld [vmem:[#allocation0 + $0x40] ss:$8 sm:$0xf]  }
  0x14   :  { %133 = vrot.lane.b32.xlu1 %v132_v28, %s195_s0  ;;  %112 = vrot.lane.b32.xlu0 %v111_v29, %s196_s9  ;;  %v153_v37 = vsel %vm83_vm0, %v151_v31, %v149_v30  ;;  %86 = vst.msk [vmem:[%s291_s1] sm:$0xff] %vm85_vm1, %v84_v34   ;;  %v92_v39 = vsel %vm83_vm0, %v90_v36, %v88_v35 }
  0x15   :  { %188 = vst.msk [vmem:[%s291_s1 + $0x8] sm:$0xff] %vm85_vm1, %v92_v39  }
  0x18   :  { %154 = vrot.lane.b32.xlu1 %v153_v37, %s197_s14  ;;  %144 = vrot.lane.b32.xlu0 %v143_v38, %s197_s14 }
  0x81   :  { %v124_v40 = vpop.permute.xlu1 %123   ;;  %v103_v41 = vpop.permute.xlu0 %102  }
  0x82   :  { %105 = vst.msk [vmem:[%s291_s1] sm:$0xff] %vm104_vm2, %v103_v41  }
  0x83   :  { %126 = vst.msk [vmem:[%s291_s1] sm:$0xff] %vm125_vm3, %v124_v40  }
  0x86   :  { %v134_v42 = vpop.permute.xlu1 %133   ;;  %v113_v43 = vpop.permute.xlu0 %112  }
  0x87   :  { %189 = vst.msk [vmem:[%s291_s1 + $0x8] sm:$0xff] %vm104_vm2, %v113_v43  }
  0x88   :  { %190 = vst.msk [vmem:[%s291_s1 + $0x8] sm:$0xff] %vm125_vm3, %v134_v42  }
  0x8a   :  { %v155_v44 = vpop.permute.xlu1 %154   ;;  %v145_v45 = vpop.permute.xlu0 %144  }
  0x8b   :  { %191 = vst.msk [vmem:[%s291_s1 + $0x8] sm:$0xff] %vm146_vm4, %v155_v44   ;;  %147 = vst.msk [vmem:[%s291_s1] sm:$0xff] %vm146_vm4, %v145_v45  }

// kernel: gc_block_forward.1
= control target key start
LH: loop header
LB: loop body
LE: loop exit
PB: predicated region body
PF: predicated region fallthrough
CT: control target
= control target key end

     0   :  { %vm78_vm0 = vcmask 130048   ;;  %s1565_s0 = inlined_call_operand.vmem [shape: f32[16,128], index: 0, kind: input, shape index: {}]   ;;  %s1566_s1 = inlined_call_operand.vmem [shape: f32[16,16], index: 1, kind: input, shape index: {}]   ;;  %s1567_s2 = inlined_call_operand.vmem [shape: f32[128,128], index: 2, kind: input, shape index: {}]   ;;  %s1568_s11 = inlined_call_operand.vmem [shape: f32[128,128], index: 11, kind: input, shape index: {}]   ;;  %s1569_s3 = inlined_call_operand.vmem [shape: f32[1,128], index: 3, kind: input, shape index: {}]   ;;  %s1570_s6 = inlined_call_operand.vmem [shape: f32[16,16], index: 6, kind: input, shape index: {}]   ;;  %s1571_s4 = inlined_call_operand.vmem [shape: f32[16,128], index: 4, kind: input, shape index: {}]   ;;  %s1572_s5 = inlined_call_operand.vmem [shape: f32[16,128], index: 5, kind: input, shape index: {}]   ;;  %s1573_s7 = inlined_call_operand.vmem [shape: f32[128,128], index: 7, kind: input, shape index: {}]   ;;  %s1574_s8 = inlined_call_operand.vmem [shape: f32[1,128], index: 8, kind: input, shape index: {}]   ;;  %s1575_s9 = inlined_call_operand.vmem [shape: f32[16,128], index: 9, kind: input, shape index: {}]   ;;  %s1576_s10 = inlined_call_operand.vmem [shape: f32[16,128], index: 10, kind: input, shape index: {}]   ;;  %s1577_s12 = inlined_call_operand.vmem [shape: f32[16,128], index: 12, kind: output, shape index: {}]  }
   0x1   :  { %v1196_v0 = vld [vmem:[%s1565_s0 + $0x8] sm:$0xff]  ;;  %v1201_v1 = vld [vmem:[%s1565_s0] sm:$0xff]  ;;  %v76_v4 = vld [vmem:[%s1567_s2 + $0x78] sm:$0xff] }
   0x2   :  { %v59_v2 = vld [vmem:[%s1566_s1] sm:$0xff]  ;;  %888 = vmatprep.subr.mxu1 %v1196_v0  ;;  %v60_v3 = vld [vmem:[%s1566_s1 + $0x8] sm:$0xff]  ;;  %v75_v5 = vld [vmem:[%s1567_s2 + $0x70] sm:$0xff] }
   0x3   :  { %892 = vmatprep.mubr.msk.f32.mxu1 %vm78_vm0, %v59_v2  ;;  %889 = vmatpush3.msra.mxu1 %v1196_v0  ;;  %v74_v6 = vld [vmem:[%s1567_s2 + $0x68] sm:$0xff]  ;;  %v73_v7 = vld [vmem:[%s1567_s2 + $0x60] sm:$0xff]  ;;  %v72_v8 = vld [vmem:[%s1567_s2 + $0x58] sm:$0xff] }
   0x4   :  { %890 = vmatprep.subr.mxu1 %v1201_v1  ;;  %v71_v9 = vld [vmem:[%s1567_s2 + $0x50] sm:$0xff]  ;;  %v70_v10 = vld [vmem:[%s1567_s2 + $0x48] sm:$0xff]  ;;  %v69_v11 = vld [vmem:[%s1567_s2 + $0x40] sm:$0xff] }
   0x5   :  { %891 = vmatpush3.msra.mxu1 %v1201_v1  ;;  %v68_v12 = vld [vmem:[%s1567_s2 + $0x38] sm:$0xff]  ;;  %v67_v13 = vld [vmem:[%s1567_s2 + $0x30] sm:$0xff]  ;;  %v66_v14 = vld [vmem:[%s1567_s2 + $0x28] sm:$0xff] }
   0x6   :  { %893 = vmatmul.mubr.msk.f32.vlgmr.msra.gmra.mxu1 %vm78_vm0, %v60_v3  ;;  %895 = vmatprep.subr.mxu1 %v76_v4  ;;  %v65_v15 = vld [vmem:[%s1567_s2 + $0x20] sm:$0xff]  ;;  %v64_v16 = vld [vmem:[%s1567_s2 + $0x18] sm:$0xff]  ;;  %v63_v17 = vld [vmem:[%s1567_s2 + $0x10] sm:$0xff] }
   0x7   :  { %896 = vmatpush3.msra.mxu1 %v76_v4  ;;  %v62_v18 = vld [vmem:[%s1567_s2 + $0x8] sm:$0xff]  ;;  %v61_v19 = vld [vmem:[%s1567_s2] sm:$0xff]  ;;  %v1266_v20 = vld [vmem:[%s1568_s11 + $0x78] sm:$0xff] }
   0x8   :  { %897 = vmatprep.subr.mxu1 %v75_v5  ;;  %v1271_v21 = vld [vmem:[%s1568_s11 + $0x70] sm:$0xff]  ;;  %930 = vmatprep.subr.mxu0 %v1266_v20  ;;  %v1279_v22 = vld [vmem:[%s1568_s11 + $0x68] sm:$0xff]  ;;  %v1286_v23 = vld [vmem:[%s1568_s11 + $0x60] sm:$0xff] }
   0x9   :  { %898 = vmatpush3.msra.mxu1 %v75_v5  ;;  %931 = vmatpush3.msra.mxu0 %v1266_v20  ;;  %v1293_v24 = vld [vmem:[%s1568_s11 + $0x58] sm:$0xff]  ;;  %v1300_v25 = vld [vmem:[%s1568_s11 + $0x50] sm:$0xff]  ;;  %v1307_v26 = vld [vmem:[%s1568_s11 + $0x48] sm:$0xff] }
   0xa   :  { %899 = vmatprep.subr.mxu1 %v74_v6  ;;  %932 = vmatprep.subr.mxu0 %v1271_v21  ;;  %v1314_v27 = vld [vmem:[%s1568_s11 + $0x40] sm:$0xff]  ;;  %v1321_v28 = vld [vmem:[%s1568_s11 + $0x38] sm:$0xff]  ;;  %v1328_v29 = vld [vmem:[%s1568_s11 + $0x30] sm:$0xff] }
   0xb   :  { %900 = vmatpush3.msra.mxu1 %v74_v6  ;;  %933 = vmatpush3.msra.mxu0 %v1271_v21  ;;  %v1335_v30 = vld [vmem:[%s1568_s11 + $0x28] sm:$0xff]  ;;  %v1342_v31 = vld [vmem:[%s1568_s11 + $0x20] sm:$0xff]  ;;  %v1349_v32 = vld [vmem:[%s1568_s11 + $0x18] sm:$0xff] }
   0xc   :  { %901 = vmatprep.subr.mxu1 %v73_v7  ;;  %934 = vmatprep.subr.mxu0 %v1279_v22  ;;  %v1383_v35 = vld [vmem:[%s1568_s11 + $0x10] sm:$0xff]  ;;  %v1391_v36 = vld [vmem:[%s1568_s11 + $0x8] sm:$0xff]  ;;  %v1400_v37 = vld [vmem:[%s1568_s11] sm:$0xff] }
   0xd   :  { %902 = vmatpush3.msra.mxu1 %v73_v7  ;;  %935 = vmatpush3.msra.mxu0 %v1279_v22  ;;  %v768_v39 = vld [vmem:[%s1569_s3] ss:$0 sm:$0xff]  ;;  %v242_v55 = vld [vmem:[%s1571_s4 + $0x8] sm:$0xff]  ;;  %v426_v7 = vld [vmem:[%s1573_s7 + $0x78] sm:$0xff] }
   0xe   :  { %903 = vmatprep.subr.mxu1 %v72_v8  ;;  %936 = vmatprep.subr.mxu0 %v1286_v23  ;;  %v409_v49 = vld [vmem:[%s1570_s6] sm:$0xff]  ;;  %v244_v58 = vld [vmem:[%s1572_s5 + $0x8] sm:$0xff] }
   0xf   :  { %904 = vmatpush3.msra.mxu1 %v72_v8  ;;  %937 = vmatpush3.msra.mxu0 %v1286_v23  ;;  %v241_v59 = vld [vmem:[%s1571_s4] sm:$0xff]  ;;  %v410_v6 = vld [vmem:[%s1570_s6 + $0x8] sm:$0xff]  ;;  %v425_v8 = vld [vmem:[%s1573_s7 + $0x70] sm:$0xff] }
  0x10   :  { %905 = vmatprep.subr.mxu1 %v71_v9  ;;  %938 = vmatprep.subr.mxu0 %v1293_v24  ;;  %v243_v62 = vld [vmem:[%s1572_s5] sm:$0xff] }
  0x11   :  { %906 = vmatpush3.msra.mxu1 %v71_v9  ;;  %939 = vmatpush3.msra.mxu0 %v1293_v24  ;;  %v424_v9 = vld [vmem:[%s1573_s7 + $0x68] sm:$0xff] }
  0x12   :  { %907 = vmatprep.subr.mxu1 %v70_v10  ;;  %940 = vmatprep.subr.mxu0 %v1300_v25 }
  0x13   :  { %908 = vmatpush3.msra.mxu1 %v70_v10  ;;  %941 = vmatpush3.msra.mxu0 %v1300_v25  ;;  %v423_v10 = vld [vmem:[%s1573_s7 + $0x60] sm:$0xff] }
  0x14   :  { %909 = vmatprep.subr.mxu1 %v69_v11  ;;  %942 = vmatprep.subr.mxu0 %v1307_v26 }
  0x15   :  { %910 = vmatpush3.msra.mxu1 %v69_v11  ;;  %943 = vmatpush3.msra.mxu0 %v1307_v26  ;;  %v422_v11 = vld [vmem:[%s1573_s7 + $0x58] sm:$0xff] }
  0x16   :  { %911 = vmatprep.subr.mxu1 %v68_v12  ;;  %944 = vmatprep.subr.mxu0 %v1314_v27 }
  0x17   :  { %912 = vmatpush3.msra.mxu1 %v68_v12  ;;  %945 = vmatpush3.msra.mxu0 %v1314_v27  ;;  %v421_v12 = vld [vmem:[%s1573_s7 + $0x50] sm:$0xff] }
  0x18   :  { %913 = vmatprep.subr.mxu1 %v67_v13  ;;  %946 = vmatprep.subr.mxu0 %v1321_v28 }
  0x19   :  { %914 = vmatpush3.msra.mxu1 %v67_v13  ;;  %947 = vmatpush3.msra.mxu0 %v1321_v28  ;;  %v420_v13 = vld [vmem:[%s1573_s7 + $0x48] sm:$0xff] }
  0x1a   :  { %915 = vmatprep.subr.mxu1 %v66_v14  ;;  %948 = vmatprep.subr.mxu0 %v1328_v29 }
  0x1b   :  { %916 = vmatpush3.msra.mxu1 %v66_v14  ;;  %949 = vmatpush3.msra.mxu0 %v1328_v29  ;;  %v419_v14 = vld [vmem:[%s1573_s7 + $0x40] sm:$0xff] }
  0x1c   :  { %917 = vmatprep.subr.mxu1 %v65_v15  ;;  %950 = vmatprep.subr.mxu0 %v1335_v30 }
  0x1d   :  { %918 = vmatpush3.msra.mxu1 %v65_v15  ;;  %951 = vmatpush3.msra.mxu0 %v1335_v30  ;;  %v418_v15 = vld [vmem:[%s1573_s7 + $0x38] sm:$0xff] }
  0x1e   :  { %919 = vmatprep.subr.mxu1 %v64_v16  ;;  %952 = vmatprep.subr.mxu0 %v1342_v31 }
  0x1f   :  { %920 = vmatpush3.msra.mxu1 %v64_v16  ;;  %953 = vmatpush3.msra.mxu0 %v1342_v31  ;;  %v417_v16 = vld [vmem:[%s1573_s7 + $0x30] sm:$0xff] }
  0x20   :  { %921 = vmatprep.subr.mxu1 %v63_v17  ;;  %954 = vmatprep.subr.mxu0 %v1349_v32 }
  0x21   :  { %922 = vmatpush3.msra.mxu1 %v63_v17  ;;  %955 = vmatpush3.msra.mxu0 %v1349_v32  ;;  %v416_v17 = vld [vmem:[%s1573_s7 + $0x28] sm:$0xff] }
  0x22   :  { %923 = vmatprep.subr.mxu1 %v62_v18  ;;  %956 = vmatprep.subr.mxu0 %v1383_v35 }
  0x23   :  { %924 = vmatpush3.msra.mxu1 %v62_v18  ;;  %957 = vmatpush3.msra.mxu0 %v1383_v35  ;;  %v415_v18 = vld [vmem:[%s1573_s7 + $0x20] sm:$0xff] }
  0x24   :  { %925 = vmatprep.subr.mxu1 %v61_v19  ;;  %958 = vmatprep.subr.mxu0 %v1391_v36 }
  0x25   :  { %926 = vmatpush3.msra.mxu1 %v61_v19  ;;  %959 = vmatpush3.msra.mxu0 %v1391_v36  ;;  %v414_v19 = vld [vmem:[%s1573_s7 + $0x18] sm:$0xff] }
  0x26   :  { %965 = vmatprep.subr.mxu1 %v1266_v20  ;;  %960 = vmatprep.subr.mxu0 %v1400_v37 }
  0x27   :  { %961 = vmatpush3.msra.mxu0 %v1400_v37 }
  0xc6   :  { %v894_v33 = vpop.f32.mrf.mxu1 }
  0xc8   :  { %v151_v34 = vpop.f32.mrf.mxu1 }
  0xc9   :  { %927 = vmatprep.mubr.f32.mxu1 %v151_v34  ;;  %v412_v34 = vld [vmem:[%s1573_s7 + $0x8] sm:$0xff] }
  0xca   :  { %928 = vmatmul.mubr.f32.vlgmr.msra.gmra.mxu1 %v894_v33  ;;  %v413_v33 = vld [vmem:[%s1573_s7 + $0x10] sm:$0xff] }
  0xcb   :  { %966 = vmatpush3.msra.mxu1 %v1266_v20 }
  0xcc   :  { %967 = vmatprep.subr.mxu1 %v1271_v21 }
  0xcd   :  { %968 = vmatpush3.msra.mxu1 %v1271_v21 }
  0xce   :  { %969 = vmatprep.subr.mxu1 %v1279_v22 }
  0xcf   :  { %970 = vmatpush3.msra.mxu1 %v1279_v22 }
  0xd0   :  { %971 = vmatprep.subr.mxu1 %v1286_v23 }
  0xd1   :  { %972 = vmatpush3.msra.mxu1 %v1286_v23 }
  0xd2   :  { %973 = vmatprep.subr.mxu1 %v1293_v24 }
  0xd3   :  { %974 = vmatpush3.msra.mxu1 %v1293_v24 }
  0xd4   :  { %975 = vmatprep.subr.mxu1 %v1300_v25 }
  0xd5   :  { %976 = vmatpush3.msra.mxu1 %v1300_v25 }
  0xd6   :  { %977 = vmatprep.subr.mxu1 %v1307_v26 }
  0xd7   :  { %978 = vmatpush3.msra.mxu1 %v1307_v26 }
  0xd8   :  { %979 = vmatprep.subr.mxu1 %v1314_v27 }
  0xd9   :  { %980 = vmatpush3.msra.mxu1 %v1314_v27 }
  0xda   :  { %981 = vmatprep.subr.mxu1 %v1321_v28 }
  0xdb   :  { %982 = vmatpush3.msra.mxu1 %v1321_v28 }
  0xdc   :  { %983 = vmatprep.subr.mxu1 %v1328_v29 }
  0xdd   :  { %984 = vmatpush3.msra.mxu1 %v1328_v29 }
  0xde   :  { %985 = vmatprep.subr.mxu1 %v1335_v30 }
  0xdf   :  { %986 = vmatpush3.msra.mxu1 %v1335_v30 }
  0xe0   :  { %987 = vmatprep.subr.mxu1 %v1342_v31 }
  0xe1   :  { %988 = vmatpush3.msra.mxu1 %v1342_v31 }
  0xe2   :  { %989 = vmatprep.subr.mxu1 %v1349_v32 }
  0xe3   :  { %990 = vmatpush3.msra.mxu1 %v1349_v32 }
  0xe4   :  { %991 = vmatprep.subr.mxu1 %v1383_v35 }
  0xe5   :  { %992 = vmatpush3.msra.mxu1 %v1383_v35 }
  0xe6   :  { %993 = vmatprep.subr.mxu1 %v1391_v36 }
  0xe7   :  { %994 = vmatpush3.msra.mxu1 %v1391_v36 }
  0xe8   :  { %995 = vmatprep.subr.mxu1 %v1400_v37 }
  0xe9   :  { %996 = vmatpush3.msra.mxu1 %v1400_v37 }
  0xea   :  { %1042 = vmatprep.subr.mxu1 %v1266_v20 }
 0x18a   :  { %v929_v38 = vpop.f32.mrf.mxu1 }
 0x18b   :  { %v238_v42 = vadd.f32 %v929_v38, %v768_v39  ;;  %v411_v38 = vld [vmem:[%s1573_s7] sm:$0xff] }
 0x18c   :  { %v232_v40 = vpop.f32.mrf.mxu1 }
 0x18d   :  { %v233_v41 = vadd.f32 %v768_v39, %v232_v40 }
 0x18f   :  { %962 = vmatprep.mubr.f32.mxu0 %v233_v41 }
 0x190   :  { %963 = vmatmul.mubr.f32.vlgmr.msra.gmra.mxu0 %v238_v42 }
 0x191   :  { %1004 = vmatprep.mubr.msk.f32.mxu0 %vm78_vm0, %v409_v49 }
 0x250   :  { %v964_v43 = vpop.f32.mrf.mxu0 }
 0x251   :  { %v321_v44 = vsub.f32 %v238_v42, %v964_v43 }
 0x252   :  { %v311_v45 = vpop.f32.mrf.mxu0 }
 0x253   :  { %v320_v46 = vsub.f32 %v233_v41, %v311_v45  ;;  %v323_v48 = vmul.f32 %v321_v44, %v321_v44  ;;  %v591_v41 = vld [vmem:[%s1575_s9 + $0x8] sm:$0xff]  ;;  %v590_v45 = vld [vmem:[%s1575_s9] sm:$0xff] }
 0x255   :  { %v322_v47 = vmul.f32 %v320_v46, %v320_v46 }
 0x257   :  { %997 = vmatprep.mubr.f32.mxu1 %v322_v47 }
 0x258   :  { %998 = vmatmul.mubr.f32.vlgmr.msra.gmra.mxu1 %v323_v48  ;;  %v592_v48 = vld [vmem:[%s1576_s10] sm:$0xff] }
 0x259   :  { %1043 = vmatpush3.msra.mxu1 %v1266_v20 }
 0x25a   :  { %1044 = vmatprep.subr.mxu1 %v1271_v21 }
 0x25b   :  { %1045 = vmatpush3.msra.mxu1 %v1271_v21 }
 0x25c   :  { %1046 = vmatprep.subr.mxu1 %v1279_v22 }
 0x25d   :  { %1047 = vmatpush3.msra.mxu1 %v1279_v22 }
 0x25e   :  { %1048 = vmatprep.subr.mxu1 %v1286_v23 }
 0x25f   :  { %1049 = vmatpush3.msra.mxu1 %v1286_v23 }
 0x260   :  { %1050 = vmatprep.subr.mxu1 %v1293_v24 }
 0x261   :  { %1051 = vmatpush3.msra.mxu1 %v1293_v24 }
 0x262   :  { %1052 = vmatprep.subr.mxu1 %v1300_v25 }
 0x263   :  { %1053 = vmatpush3.msra.mxu1 %v1300_v25 }
 0x264   :  { %1054 = vmatprep.subr.mxu1 %v1307_v26 }
 0x265   :  { %1055 = vmatpush3.msra.mxu1 %v1307_v26 }
 0x266   :  { %1056 = vmatprep.subr.mxu1 %v1314_v27 }
 0x267   :  { %1057 = vmatpush3.msra.mxu1 %v1314_v27 }
 0x268   :  { %1058 = vmatprep.subr.mxu1 %v1321_v28 }
 0x269   :  { %1059 = vmatpush3.msra.mxu1 %v1321_v28 }
 0x26a   :  { %1060 = vmatprep.subr.mxu1 %v1328_v29 }
 0x26b   :  { %1061 = vmatpush3.msra.mxu1 %v1328_v29 }
 0x26c   :  { %1062 = vmatprep.subr.mxu1 %v1335_v30 }
 0x26d   :  { %1063 = vmatpush3.msra.mxu1 %v1335_v30 }
 0x26e   :  { %1064 = vmatprep.subr.mxu1 %v1342_v31 }
 0x26f   :  { %1065 = vmatpush3.msra.mxu1 %v1342_v31 }
 0x270   :  { %1066 = vmatprep.subr.mxu1 %v1349_v32 }
 0x271   :  { %1067 = vmatpush3.msra.mxu1 %v1349_v32 }
 0x272   :  { %1068 = vmatprep.subr.mxu1 %v1383_v35 }
 0x273   :  { %1069 = vmatpush3.msra.mxu1 %v1383_v35 }
 0x274   :  { %1070 = vmatprep.subr.mxu1 %v1391_v36 }
 0x275   :  { %1071 = vmatpush3.msra.mxu1 %v1391_v36 }
 0x276   :  { %1072 = vmatprep.subr.mxu1 %v1400_v37 }
 0x277   :  { %1073 = vmatpush3.msra.mxu1 %v1400_v37 }
 0x318   :  { %v999_v50 = vpop.f32.mrf.mxu1 }
 0x319   :  { %v396_v51 = vadd.f32 1e-05, %v999_v50 }
 0x31a   :  { %v390_v52 = vpop.f32.mrf.mxu1 }
 0x31b   :  { %1112 = vrsqrt.f32 %v396_v51  ;;  %v391_v53 = vadd.f32 1e-05, %v390_v52 }
 0x31d   :  { %1114 = vrsqrt.f32 %v391_v53 }
 0x328   :  { %v1113_v54 = vpop.eup %1112 }
 0x329   :  { %v402_v56 = vmul.f32 %v1113_v54, %v321_v44  ;;  %v593_v44 = vld [vmem:[%s1576_s10 + $0x8] sm:$0xff] }
 0x32a   :  { %v1115_v57 = vpop.eup %1114 }
 0x32b   :  { %v404_v60 = vmul.f32 %v402_v56, %v242_v55  ;;  %v401_v61 = vmul.f32 %v1115_v57, %v320_v46 }
 0x32d   :  { %v406_v63 = vadd.f32 %v404_v60, %v244_v58  ;;  %v403_v2 = vmul.f32 %v401_v61, %v241_v59 }
 0x32f   :  { %1116 = vtanh.f32 %v406_v63  ;;  %v405_v3 = vadd.f32 %v403_v2, %v243_v62 }
 0x331   :  { %1118 = vtanh.f32 %v405_v3 }
 0x33c   :  { %v1117_v4 = vpop.eup %1116 }
 0x33d   :  { %1000 = vmatprep.subr.mxu0 %v1117_v4 }
 0x33e   :  { %v1119_v5 = vpop.eup %1118  ;;  %1001 = vmatpush3.msra.mxu0 %v1117_v4 }
 0x33f   :  { %1002 = vmatprep.subr.mxu0 %v1119_v5 }
 0x340   :  { %1003 = vmatpush3.msra.mxu0 %v1119_v5 }
 0x341   :  { %1005 = vmatmul.mubr.msk.f32.vlgmr.msra.gmra.mxu0 %vm78_vm0, %v410_v6  ;;  %1007 = vmatprep.subr.mxu0 %v426_v7 }
 0x342   :  { %1008 = vmatpush3.msra.mxu0 %v426_v7 }
 0x343   :  { %1009 = vmatprep.subr.mxu0 %v425_v8 }
 0x344   :  { %1010 = vmatpush3.msra.mxu0 %v425_v8 }
 0x345   :  { %1011 = vmatprep.subr.mxu0 %v424_v9 }
 0x346   :  { %1012 = vmatpush3.msra.mxu0 %v424_v9 }
 0x347   :  { %1013 = vmatprep.subr.mxu0 %v423_v10 }
 0x348   :  { %1014 = vmatpush3.msra.mxu0 %v423_v10 }
 0x349   :  { %1015 = vmatprep.subr.mxu0 %v422_v11 }
 0x34a   :  { %1016 = vmatpush3.msra.mxu0 %v422_v11 }
 0x34b   :  { %1017 = vmatprep.subr.mxu0 %v421_v12 }
 0x34c   :  { %1018 = vmatpush3.msra.mxu0 %v421_v12 }
 0x34d   :  { %1019 = vmatprep.subr.mxu0 %v420_v13 }
 0x34e   :  { %1020 = vmatpush3.msra.mxu0 %v420_v13 }
 0x34f   :  { %1021 = vmatprep.subr.mxu0 %v419_v14 }
 0x350   :  { %1022 = vmatpush3.msra.mxu0 %v419_v14 }
 0x351   :  { %1023 = vmatprep.subr.mxu0 %v418_v15 }
 0x352   :  { %1024 = vmatpush3.msra.mxu0 %v418_v15 }
 0x353   :  { %1025 = vmatprep.subr.mxu0 %v417_v16 }
 0x354   :  { %1026 = vmatpush3.msra.mxu0 %v417_v16 }
 0x355   :  { %1027 = vmatprep.subr.mxu0 %v416_v17 }
 0x356   :  { %1028 = vmatpush3.msra.mxu0 %v416_v17 }
 0x357   :  { %1029 = vmatprep.subr.mxu0 %v415_v18 }
 0x358   :  { %1030 = vmatpush3.msra.mxu0 %v415_v18 }
 0x359   :  { %1031 = vmatprep.subr.mxu0 %v414_v19 }
 0x35a   :  { %1032 = vmatpush3.msra.mxu0 %v414_v19 }
 0x35b   :  { %1033 = vmatprep.subr.mxu0 %v413_v33 }
 0x35c   :  { %1034 = vmatpush3.msra.mxu0 %v413_v33 }
 0x35d   :  { %1035 = vmatprep.subr.mxu0 %v412_v34 }
 0x35e   :  { %1036 = vmatpush3.msra.mxu0 %v412_v34 }
 0x35f   :  { %1037 = vmatprep.subr.mxu0 %v411_v38 }
 0x360   :  { %1038 = vmatpush3.msra.mxu0 %v411_v38 }
 0x361   :  { %1077 = vmatprep.subr.mxu0 %v1266_v20 }
 0x401   :  { %v1006_v39 = vpop.f32.mrf.mxu0 }
 0x403   :  { %v500_v40 = vpop.f32.mrf.mxu0 }
 0x404   :  { %1039 = vmatprep.mubr.f32.mxu0 %v500_v40 }
 0x405   :  { %1040 = vmatmul.mubr.f32.vlgmr.msra.gmra.mxu0 %v1006_v39 }
 0x406   :  { %1078 = vmatpush3.msra.mxu0 %v1266_v20 }
 0x407   :  { %1079 = vmatprep.subr.mxu0 %v1271_v21 }
 0x408   :  { %1080 = vmatpush3.msra.mxu0 %v1271_v21  ;;  %v771_v21 = vld [vmem:[%s1574_s8] ss:$0 sm:$0xff] }
 0x409   :  { %1081 = vmatprep.subr.mxu0 %v1279_v22 }
 0x40a   :  { %1082 = vmatpush3.msra.mxu0 %v1279_v22 }
 0x40b   :  { %1083 = vmatprep.subr.mxu0 %v1286_v23 }
 0x40c   :  { %1084 = vmatpush3.msra.mxu0 %v1286_v23 }
 0x40d   :  { %1085 = vmatprep.subr.mxu0 %v1293_v24 }
 0x40e   :  { %1086 = vmatpush3.msra.mxu0 %v1293_v24 }
 0x40f   :  { %1087 = vmatprep.subr.mxu0 %v1300_v25 }
 0x410   :  { %1088 = vmatpush3.msra.mxu0 %v1300_v25 }
 0x411   :  { %1089 = vmatprep.subr.mxu0 %v1307_v26 }
 0x412   :  { %1090 = vmatpush3.msra.mxu0 %v1307_v26 }
 0x413   :  { %1091 = vmatprep.subr.mxu0 %v1314_v27 }
 0x414   :  { %1092 = vmatpush3.msra.mxu0 %v1314_v27 }
 0x415   :  { %1093 = vmatprep.subr.mxu0 %v1321_v28 }
 0x416   :  { %1094 = vmatpush3.msra.mxu0 %v1321_v28 }
 0x417   :  { %1095 = vmatprep.subr.mxu0 %v1328_v29 }
 0x418   :  { %1096 = vmatpush3.msra.mxu0 %v1328_v29 }
 0x419   :  { %1097 = vmatprep.subr.mxu0 %v1335_v30 }
 0x41a   :  { %1098 = vmatpush3.msra.mxu0 %v1335_v30 }
 0x41b   :  { %1099 = vmatprep.subr.mxu0 %v1342_v31 }
 0x41c   :  { %1100 = vmatpush3.msra.mxu0 %v1342_v31 }
 0x41d   :  { %1101 = vmatprep.subr.mxu0 %v1349_v32 }
 0x41e   :  { %1102 = vmatpush3.msra.mxu0 %v1349_v32 }
 0x41f   :  { %1103 = vmatprep.subr.mxu0 %v1383_v35 }
 0x420   :  { %1104 = vmatpush3.msra.mxu0 %v1383_v35 }
 0x421   :  { %1105 = vmatprep.subr.mxu0 %v1391_v36 }
 0x422   :  { %1106 = vmatpush3.msra.mxu0 %v1391_v36 }
 0x423   :  { %1107 = vmatprep.subr.mxu0 %v1400_v37 }
 0x424   :  { %1108 = vmatpush3.msra.mxu0 %v1400_v37 }
 0x4c5   :  { %v1041_v20 = vpop.f32.mrf.mxu0 }
 0x4c6   :  { %v587_v24 = vadd.f32 %v1041_v20, %v771_v21 }
 0x4c7   :  { %v581_v22 = vpop.f32.mrf.mxu0 }
 0x4c8   :  { %v582_v23 = vadd.f32 %v771_v21, %v581_v22 }
 0x4ca   :  { %1074 = vmatprep.mubr.f32.mxu1 %v582_v23 }
 0x4cb   :  { %1075 = vmatmul.mubr.f32.vlgmr.msra.gmra.mxu1 %v587_v24 }
 0x58b   :  { %v1076_v25 = vpop.f32.mrf.mxu1 }
 0x58c   :  { %v670_v26 = vsub.f32 %v587_v24, %v1076_v25 }
 0x58d   :  { %v660_v27 = vpop.f32.mrf.mxu1 }
 0x58e   :  { %v669_v28 = vsub.f32 %v582_v23, %v660_v27  ;;  %v672_v30 = vmul.f32 %v670_v26, %v670_v26 }
 0x590   :  { %v671_v29 = vmul.f32 %v669_v28, %v669_v28 }
 0x592   :  { %1109 = vmatprep.mubr.f32.mxu0 %v671_v29 }
 0x593   :  { %1110 = vmatmul.mubr.f32.vlgmr.msra.gmra.mxu0 %v672_v30 }
 0x653   :  { %v1111_v31 = vpop.f32.mrf.mxu0 }
 0x654   :  { %v745_v32 = vadd.f32 1e-05, %v1111_v31 }
 0x655   :  { %v739_v35 = vpop.f32.mrf.mxu0 }
 0x656   :  { %1120 = vrsqrt.f32 %v745_v32  ;;  %v740_v36 = vadd.f32 1e-05, %v739_v35 }
 0x658   :  { %1122 = vrsqrt.f32 %v740_v36 }
 0x663   :  { %v1121_v37 = vpop.eup %1120 }
 0x664   :  { %v751_v42 = vmul.f32 %v1121_v37, %v670_v26 }
 0x665   :  { %v1123_v43 = vpop.eup %1122 }
 0x666   :  { %v753_v46 = vmul.f32 %v751_v42, %v591_v41  ;;  %v750_v47 = vmul.f32 %v1123_v43, %v669_v28 }
 0x668   :  { %v755_v49 = vadd.f32 %v753_v46, %v593_v44  ;;  %v752_v50 = vmul.f32 %v750_v47, %v590_v45 }
 0x66a   :  { %1124 = vtanh.f32 %v755_v49  ;;  %v754_v51 = vadd.f32 %v752_v50, %v592_v48 }
 0x66c   :  { %1126 = vtanh.f32 %v754_v51 }
 0x677   :  { %v1125_v52 = vpop.eup %1124 }
 0x678   :  { %v759_v53 = vadd.f32 %v1125_v52, %v1196_v0 }
 0x679   :  { %v1127_v54 = vpop.eup %1126 }
 0x67a   :  { %761 = vst [vmem:[%s1577_s12 + $0x8] sm:$0xff] %v759_v53  ;;  %v758_v55 = vadd.f32 %v1127_v54, %v1201_v1 }
 0x67c   :  { %760 = vst [vmem:[%s1577_s12] sm:$0xff] %v758_v55 }

</bundles_post_ra>
